<compile_context>
chip_gen: v6e
topology: v6e:2x2x1
jax: 0.10.0
libtpu: 0.0.40
codegen_flags: <defaults>
</compile_context>

<pallas_src>
import jax
import jax.numpy as jnp
from jax.experimental import pallas as pl
from jax.experimental.pallas import tpu as pltpu


# ----------------------------------------------------------------------------
# shared FFN building blocks (Linear -> ReLU -> LayerNorm -> Dropout(id)) x n
# followed by a final Linear, matching Encoder._build_ffn.
# ----------------------------------------------------------------------------
def _hidden_block(h, w_i, b_i, g_i, beta_i, d_real, compute_dtype):
    z = jnp.dot(h.astype(compute_dtype), w_i,
                preferred_element_type=jnp.float32) + b_i
    z = jnp.maximum(z, 0.0)                                   # ReLU
    # One-pass LayerNorm stats over the REAL feature count d_real. Padded
    # columns are zero so sums are unaffected; one-pass (E[z^2]-mu^2) is
    # required here (two-pass would pick up (0-mu)^2 from padded columns).
    inv_d = 1.0 / d_real
    mu = jnp.sum(z, axis=-1, keepdims=True) * inv_d
    ms = jnp.sum(z * z, axis=-1, keepdims=True) * inv_d
    var = jnp.maximum(ms - mu * mu, 0.0)
    z = (z - mu) * jax.lax.rsqrt(var + 1e-5)
    return z * g_i + beta_i          # padded cols: gamma=0, beta=0 -> stay 0


def _apply_ffn(h, n_hidden, hw_ref, hb_ref, g_ref, bt_ref, fw_ref, fb_ref,
               d_real, compute_dtype):
    for i in range(n_hidden):                                 # static, unrolled
        h = _hidden_block(h, hw_ref[i], hb_ref[i], g_ref[i], bt_ref[i],
                          d_real, compute_dtype)
    return jnp.dot(h.astype(compute_dtype), fw_ref[...],
                   preferred_element_type=jnp.float32) + fb_ref[0]


# ----------------------------------------------------------------------------
# Kernel A: projection + amino_acid_ffn over Bt*L tokens + vectorized masked
# mean. Emits one lane/sublane-dense (Bt, Dp) slab per grid step.
# ----------------------------------------------------------------------------
def _make_token_kernel(Bt, L, n_hidden, d_real, compute_dtype):
    def kernel(x_ref, lens_ref, *refs):
        out_ref = refs[-1]
        w = refs[:-1]
        pW, pb = w[0], w[1]
        if n_hidden > 0:
            hW, hb, g, bt, fW, fb = w[2], w[3], w[4], w[5], w[6], w[7]
        else:
            hW = hb = g = bt = None
            fW, fb = w[2], w[3]

        Din_p = x_ref.shape[-1]
        Dp = pW.shape[-1]

        # (Bt, L, Din_p) -> (Bt*L, Din_p): one big-M matmul per step.
        x = x_ref[...].reshape(Bt * L, Din_p)
        h = jnp.dot(x.astype(compute_dtype), pW[...],
                    preferred_element_type=jnp.float32) + pb[0]
        h = _apply_ffn(h, n_hidden, hW, hb, g, bt, fW, fb, d_real,
                       compute_dtype)

        # Vectorized masked mean (prefix mask rebuilt from lengths).
        h3 = h.reshape(Bt, L, Dp)
        lens = lens_ref[...]                                     # (Bt, 1) i32
        pos = jax.lax.broadcasted_iota(jnp.int32, (Bt, L, 1), 1)
        mask = (pos < lens[:, None, :]).astype(jnp.float32)      # (Bt, L, 1)
        s = jnp.sum(h3 * mask, axis=1)                           # (Bt, Dp)
        inv = 1.0 / jnp.maximum(lens.astype(jnp.float32), 1.0)   # (Bt, 1)
        out_ref[...] = (s * inv).astype(out_ref.dtype)           # dense slab

    return kernel


# ----------------------------------------------------------------------------
# Kernel B: embedding_ffn on pooled means + L2-normalize + exp(temp/2) scale.
# Runs in f32 (tiny), temperature scale precomputed in the wrapper (SMEM).
# ----------------------------------------------------------------------------
def _make_pooled_kernel(n_hidden, d_real):
    def kernel(pooled_ref, scale_ref, *refs):
        out_ref = refs[-1]
        w = refs[:-1]
        if n_hidden > 0:
            hW, hb, g, bt, fW, fb = w[0], w[1], w[2], w[3], w[4], w[5]
        else:
            hW = hb = g = bt = None
            fW, fb = w[0], w[1]

        h = pooled_ref[...]                                      # (Bq, Dp) f32
        e = _apply_ffn(h, n_hidden, hW, hb, g, bt, fW, fb, d_real, jnp.float32)

        # F.normalize(dim=-1) * exp(temperature / 2), fused into one scale.
        ss = jnp.sum(e * e, axis=-1, keepdims=True)              # (Bq, 1)
        inv = jax.lax.rsqrt(jnp.maximum(ss, 1e-24))              # 1/max(||e||,1e-12)
        scale = scale_ref[0, 0]                                  # exp(temp/2)
        out_ref[...] = (e * (inv * scale)).astype(out_ref.dtype)

    return kernel


# ----------------------------------------------------------------------------
# Generation-aware configuration helpers.
# ----------------------------------------------------------------------------
def _tpu_config():
    phys = None
    try:
        phys = int(pltpu.get_tpu_info().vmem_capacity_bytes)
    except Exception:
        phys = None
    if phys is None or phys <= 0:
        phys = 64 * 1024 * 1024          # conservative: v7x per-TensorCore
    two_cores = phys <= 64 * 1024 * 1024  # v7x: 64 MiB/TC, 2 TCs; v5e/v6e: 128 MiB, 1 TC
    vmem_limit = max(32 * 1024 * 1024,
                     min(phys * 3 // 4, 112 * 1024 * 1024))
    return vmem_limit, two_cores


def _pick_batch_tile(B, L, Din_p, Dp, in_bytes, two_cores, vmem_limit):
    """Divisor Bt of B: lane/sublane-safe blocks ((Bt==B) or Bt%8==0), big
    enough MXU rows per step, sized to the VMEM budget; on v7x prefer an even
    >=2-step grid so both TensorCores get balanced work."""
    divisors = [d for d in range(1, B + 1) if B % d == 0]
    divisors = [d for d in divisors if d == B or d % 8 == 0]
    if two_cores:
        even = [d for d in divisors if (B // d) >= 2 and (B // d) % 2 == 0]
        cands = even or divisors
        target_rows = 512
    else:
        cands = divisors
        target_rows = 1024

    def fits(d):
        x_bytes = 3 * d * L * Din_p * in_bytes       # pipelined input buffers
        act_bytes = 4 * d * L * Dp * 4               # rough f32 working set
        out_bytes = 2 * d * Dp * 4
        return x_bytes + act_bytes + out_bytes <= int(vmem_limit * 0.6)

    good = [d for d in cands if fits(d)] or [cands[0]]
    for d in good:
        if d * L >= target_rows:
            return d
    return good[-1]


def _const_spec(arr):
    """Full-array weight block, constant index map, single-buffered."""
    nd = arr.ndim
    return pl.BlockSpec(arr.shape, lambda b, _nd=nd: (0,) * _nd,
                        pipeline_mode=pl.Buffered(1))


def _round_up(x, m):
    return ((x + m - 1) // m) * m


def _pad_to(a, shape):
    pads = [(0, t - s) for s, t in zip(a.shape, shape)]
    if all(p == (0, 0) for p in pads):
        return a
    return jnp.pad(a, pads)


# ----------------------------------------------------------------------------
# Wrapper: one Encoder.forward, given the (stubbed) ESM last_hidden_state.
# ----------------------------------------------------------------------------
def encoder_forward(esm_hidden, attn_mask, temperature, params,
                    compute_dtype=jnp.bfloat16):
    B, L, Din = esm_hidden.shape
    D = params["proj_w"].shape[1]
    n1 = params["aa_hw"].shape[0]
    n2 = params["emb_hw"].shape[0]

    LANE = 128
    Din_p = _round_up(Din, LANE)
    Dp = _round_up(D, LANE)

    cd = compute_dtype
    vmem_limit, two_cores = _tpu_config()

    # Zero-pad input & weights to lane-aligned shapes (padded columns remain
    # exactly zero through both FFNs; LayerNorm divides by the real D).
    x = _pad_to(esm_hidden, (B, L, Din_p)).astype(cd)
    seq_lens = jnp.sum(attn_mask, axis=1).astype(jnp.int32).reshape(B, 1)
    temp_scale = jnp.exp(
        jnp.asarray(temperature, jnp.float32) / 2.0).reshape(1, 1)

    # --- token-level pass: projection + amino_acid_ffn + masked mean ---------
    tok_w = [_pad_to(params["proj_w"], (Din_p, Dp)).astype(cd),
             _pad_to(params["proj_b"], (1, Dp)).astype(jnp.float32)]
    if n1 > 0:   # guard h1 == 1 (zero hidden blocks): never pass 0-sized arrays
        tok_w += [_pad_to(params["aa_hw"], (n1, Dp, Dp)).astype(cd),
                  _pad_to(params["aa_hb"], (n1, Dp)).astype(jnp.float32),
                  _pad_to(params["aa_g"], (n1, Dp)).astype(jnp.float32),
                  _pad_to(params["aa_bt"], (n1, Dp)).astype(jnp.float32)]
    tok_w += [_pad_to(params["aa_fw"], (Dp, Dp)).astype(cd),
              _pad_to(params["aa_fb"], (1, Dp)).astype(jnp.float32)]

    in_bytes = jnp.dtype(cd).itemsize
    Bt = _pick_batch_tile(B, L, Din_p, Dp, in_bytes, two_cores, vmem_limit)
    n_steps = B // Bt

    # Deeper pipelining on the streaming input on v7x when the grid is long.
    x_kwargs = ({"pipeline_mode": pl.Buffered(3)}
                if (two_cores and n_steps >= 3) else {})
    in_specs = ([pl.BlockSpec((Bt, L, Din_p), lambda b: (b, 0, 0), **x_kwargs),
                 pl.BlockSpec((Bt, 1), lambda b: (b, 0))]
                + [_const_spec(w) for w in tok_w])

    pooled = pl.pallas_call(
        _make_token_kernel(Bt, L, n1, float(D), cd),
        out_shape=jax.ShapeDtypeStruct((B, Dp), jnp.float32),
        grid=(n_steps,),
        in_specs=in_specs,
        out_specs=pl.BlockSpec((Bt, Dp), lambda b: (b, 0)),
        compiler_params=pltpu.CompilerParams(
            dimension_semantics=("parallel",),
            vmem_limit_bytes=vmem_limit),
    )(x, seq_lens, *tok_w)

    # --- pooled pass: embedding_ffn + normalize + temperature scale (f32) ----
    emb_w = []
    if n2 > 0:
        emb_w += [_pad_to(params["emb_hw"], (n2, Dp, Dp)).astype(jnp.float32),
                  _pad_to(params["emb_hb"], (n2, Dp)).astype(jnp.float32),
                  _pad_to(params["emb_g"], (n2, Dp)).astype(jnp.float32),
                  _pad_to(params["emb_bt"], (n2, Dp)).astype(jnp.float32)]
    emb_w += [_pad_to(params["emb_fw"], (Dp, Dp)).astype(jnp.float32),
              _pad_to(params["emb_fb"], (1, Dp)).astype(jnp.float32)]

    # Tile the pooled pass over batch only when it pays off (v7x, large B).
    n_steps_b = 2 if (two_cores and B >= 256 and B % 16 == 0) else 1
    BtB = B // n_steps_b

    out_p = pl.pallas_call(
        _make_pooled_kernel(n2, float(D)),
        out_shape=jax.ShapeDtypeStruct((B, Dp), jnp.float32),
        grid=(n_steps_b,),
        in_specs=[pl.BlockSpec((BtB, Dp), lambda i: (i, 0)),
                  pl.BlockSpec(memory_space=pltpu.MemorySpace.SMEM)]
                 + [_const_spec(w) for w in emb_w],
        out_specs=pl.BlockSpec((BtB, Dp), lambda i: (i, 0)),
        compiler_params=pltpu.CompilerParams(
            dimension_semantics=("parallel",),
            vmem_limit_bytes=vmem_limit),
    )(pooled, temp_scale, *emb_w)

    return out_p[:, :D]


# ----------------------------------------------------------------------------
# Parameter init (matches nn.Linear / nn.LayerNorm defaults), ESM stub, model.
# ----------------------------------------------------------------------------
def init_encoder_params(key, input_dim, embedding_dim, h1, h2):
    n1, n2 = h1 - 1, h2 - 1
    ks = jax.random.split(key, 10)

    def lin(k, fan_in, shape):
        bound = 1.0 / float(fan_in) ** 0.5
        return jax.random.uniform(k, shape, jnp.float32, -bound, bound)

    p = {}
    p["proj_w"] = lin(ks[0], input_dim, (input_dim, embedding_dim))
    p["proj_b"] = lin(ks[1], input_dim, (1, embedding_dim))
    # amino_acid_ffn: n1 hidden blocks + final linear
    p["aa_hw"] = lin(ks[2], embedding_dim, (n1, embedding_dim, embedding_dim))
    p["aa_hb"] = lin(ks[3], embedding_dim, (n1, embedding_dim))
    p["aa_g"] = jnp.ones((n1, embedding_dim), jnp.float32)     # LayerNorm gamma
    p["aa_bt"] = jnp.zeros((n1, embedding_dim), jnp.float32)   # LayerNorm beta
    p["aa_fw"] = lin(ks[4], embedding_dim, (embedding_dim, embedding_dim))
    p["aa_fb"] = lin(ks[5], embedding_dim, (1, embedding_dim))
    # embedding_ffn: n2 hidden blocks + final linear
    p["emb_hw"] = lin(ks[6], embedding_dim, (n2, embedding_dim, embedding_dim))
    p["emb_hb"] = lin(ks[7], embedding_dim, (n2, embedding_dim))
    p["emb_g"] = jnp.ones((n2, embedding_dim), jnp.float32)
    p["emb_bt"] = jnp.zeros((n2, embedding_dim), jnp.float32)
    p["emb_fw"] = lin(ks[8], embedding_dim, (embedding_dim, embedding_dim))
    p["emb_fb"] = lin(ks[9], embedding_dim, (1, embedding_dim))
    return p


def fake_esm(table, input_ids):
    # TODO(synk): stand-in for the pretrained ESM model; deterministic lookup.
    return table[input_ids]   # (B, L, input_dim)


def extended_clip_forward(pep_seq, rec_seq, temperature, pep_params, rec_params,
                          esm_table):
    pep_hidden = fake_esm(esm_table, pep_seq["input_ids"])
    rec_hidden = fake_esm(esm_table, rec_seq["input_ids"])
    pep_emb = encoder_forward(pep_hidden, pep_seq["attention_mask"],
                              temperature, pep_params)
    rec_emb = encoder_forward(rec_hidden, rec_seq["attention_mask"],
                              temperature, rec_params)
    return pep_emb, rec_emb


# ----------------------------------------------------------------------------
# Pure-JAX f32 reference (mirrors the PyTorch module) for a sanity check.
# ----------------------------------------------------------------------------
def _ffn_ref(h, hw, hb, g, bt, fw, fb):
    for i in range(hw.shape[0]):
        z = h @ hw[i] + hb[i]
        z = jnp.maximum(z, 0.0)
        mu = z.mean(-1, keepdims=True)
        var = ((z - mu) ** 2).mean(-1, keepdims=True)
        z = (z - mu) / jnp.sqrt(var + 1e-5)
        h = z * g[i] + bt[i]
    return h @ fw + fb[0]


def encoder_reference(esm_hidden, attn_mask, temperature, p):
    h = esm_hidden @ p["proj_w"] + p["proj_b"][0]
    h = _ffn_ref(h, p["aa_hw"], p["aa_hb"], p["aa_g"], p["aa_bt"],
                 p["aa_fw"], p["aa_fb"])
    m = attn_mask.astype(jnp.float32)[..., None]
    s = jnp.sum(h * m, axis=1)
    cnt = jnp.maximum(jnp.sum(m, axis=1), 1.0)
    mean = s / cnt
    e = _ffn_ref(mean, p["emb_hw"], p["emb_hb"], p["emb_g"], p["emb_bt"],
                 p["emb_fw"], p["emb_fb"])
    nrm = jnp.maximum(jnp.sqrt(jnp.sum(e * e, -1, keepdims=True)), 1e-12)
    return (e / nrm) * jnp.exp(jnp.asarray(temperature, jnp.float32) / 2.0)


if __name__ == "__main__":
    B, L = 2, 8
    input_dim, embedding_dim = 32, 32
    h1, h2 = 2, 2
    vocab = 24

    key = jax.random.PRNGKey(0)
    k_pep, k_rec, k_tab, k_ids_p, k_ids_r = jax.random.split(key, 5)

    pep_params = init_encoder_params(k_pep, input_dim, embedding_dim, h1, h2)
    rec_params = init_encoder_params(k_rec, input_dim, embedding_dim, h1, h2)
    temperature = jnp.float32(1.0)   # nn.Parameter(torch.tensor(1.0))

    esm_table = 0.02 * jax.random.normal(k_tab, (vocab, input_dim), jnp.float32)

    pos = jnp.arange(L)[None, :]
    pep_seq = {
        "input_ids": jax.random.randint(k_ids_p, (B, L), 0, vocab),
        "attention_mask": (pos < jnp.array([[6], [8]])).astype(jnp.int32),
    }
    rec_seq = {
        "input_ids": jax.random.randint(k_ids_r, (B, L), 0, vocab),
        "attention_mask": (pos < jnp.array([[8], [5]])).astype(jnp.int32),
    }

    pep_emb, rec_emb = extended_clip_forward(pep_seq, rec_seq, temperature,
                                             pep_params, rec_params, esm_table)
    jax.block_until_ready((pep_emb, rec_emb))
    assert pep_emb.shape == (B, embedding_dim)
    assert rec_emb.shape == (B, embedding_dim)

    # correctness check against the pure-JAX f32 reference (loose tol for bf16)
    pep_ref = encoder_reference(fake_esm(esm_table, pep_seq["input_ids"]),
                                pep_seq["attention_mask"], temperature, pep_params)
    rec_ref = encoder_reference(fake_esm(esm_table, rec_seq["input_ids"]),
                                rec_seq["attention_mask"], temperature, rec_params)
    max_diff = float(jnp.maximum(jnp.max(jnp.abs(pep_emb - pep_ref)),
                                 jnp.max(jnp.abs(rec_emb - rec_ref))))
    assert max_diff < 5e-2, f"mismatch vs reference: {max_diff}"

    print("KERNEL_OK")
</pallas_src>

<mosaic_0001>
module attributes {stable_mosaic.version = 11 : i64} {
  func.func @kernel(%arg0: i32, %arg1: memref<2x8x128xbf16, #tpu.memory_space<vmem>>, %arg2: memref<2x1xi32, #tpu.memory_space<vmem>>, %arg3: memref<128x128xbf16, #tpu.memory_space<vmem>>, %arg4: memref<1x128xf32, #tpu.memory_space<vmem>>, %arg5: memref<1x128x128xbf16, #tpu.memory_space<vmem>>, %arg6: memref<1x128xf32, #tpu.memory_space<vmem>>, %arg7: memref<1x128xf32, #tpu.memory_space<vmem>>, %arg8: memref<1x128xf32, #tpu.memory_space<vmem>>, %arg9: memref<128x128xbf16, #tpu.memory_space<vmem>>, %arg10: memref<1x128xf32, #tpu.memory_space<vmem>>, %arg11: memref<2x128xf32, #tpu.memory_space<vmem>>) attributes {dimension_semantics = [#tpu.dimension_semantics<parallel>], iteration_bounds = array<i64: 1>, scalar_prefetch = 0 : i64, scratch_operands = 0 : i64, tpu.core_type = #tpu.core_type<tc>, window_params = [{transform_indices = @transform_0, window_bounds = array<i64: 2, 8, 128>}, {transform_indices = @transform_1, window_bounds = array<i64: 2, 1>}, {pipeline_mode = #tpu.pipeline_mode<synchronous>, transform_indices = @transform_2, window_bounds = array<i64: 128, 128>}, {pipeline_mode = #tpu.pipeline_mode<synchronous>, transform_indices = @transform_3, window_bounds = array<i64: 1, 128>}, {pipeline_mode = #tpu.pipeline_mode<synchronous>, transform_indices = @transform_4, window_bounds = array<i64: 1, 128, 128>}, {pipeline_mode = #tpu.pipeline_mode<synchronous>, transform_indices = @transform_5, window_bounds = array<i64: 1, 128>}, {pipeline_mode = #tpu.pipeline_mode<synchronous>, transform_indices = @transform_6, window_bounds = array<i64: 1, 128>}, {pipeline_mode = #tpu.pipeline_mode<synchronous>, transform_indices = @transform_7, window_bounds = array<i64: 1, 128>}, {pipeline_mode = #tpu.pipeline_mode<synchronous>, transform_indices = @transform_8, window_bounds = array<i64: 128, 128>}, {pipeline_mode = #tpu.pipeline_mode<synchronous>, transform_indices = @transform_9, window_bounds = array<i64: 1, 128>}, {transform_indices = @transform_10, window_bounds = array<i64: 2, 128>}]} {
    %c0 = arith.constant 0 : index
    %c0_0 = arith.constant 0 : index
    %c0_1 = arith.constant 0 : index
    %0 = vector.load %arg1[%c0, %c0_0, %c0_1] : memref<2x8x128xbf16, #tpu.memory_space<vmem>>, vector<2x8x128xbf16>
    %1 = vector.shape_cast %0 : vector<2x8x128xbf16> to vector<16x128xbf16>
    %c0_2 = arith.constant 0 : index
    %c0_3 = arith.constant 0 : index
    %2 = vector.load %arg3[%c0_2, %c0_3] : memref<128x128xbf16, #tpu.memory_space<vmem>>, vector<128x128xbf16>
    %cst = arith.constant dense<0.000000e+00> : vector<16x128xf32>
    %3 = tpu.matmul %1, %2, %cst {dimension_numbers = #tpu.dot_dimension_numbers<[1], [0], [0], [1], [0, 0, 1, 1], [], []>} : vector<16x128xbf16>, vector<128x128xbf16>, vector<16x128xf32> -> vector<16x128xf32>
    %c0_4 = arith.constant 0 : index
    %c0_5 = arith.constant 0 : index
    %4 = vector.load %arg4[%c0_4, %c0_5] : memref<1x128xf32, #tpu.memory_space<vmem>>, vector<1x128xf32>
    %5 = vector.shape_cast %4 : vector<1x128xf32> to vector<128xf32>
    %6 = vector.shape_cast %5 : vector<128xf32> to vector<1x128xf32>
    %7 = vector.broadcast %6 : vector<1x128xf32> to vector<16x128xf32>
    %8 = arith.addf %3, %7 : vector<16x128xf32>
    %c0_6 = arith.constant 0 : index
    %c0_7 = arith.constant 0 : index
    %c0_8 = arith.constant 0 : index
    %9 = vector.load %arg5[%c0_6, %c0_7, %c0_8] : memref<1x128x128xbf16, #tpu.memory_space<vmem>>, vector<1x128x128xbf16>
    %10 = vector.shape_cast %9 : vector<1x128x128xbf16> to vector<128x128xbf16>
    %c0_9 = arith.constant 0 : index
    %c0_10 = arith.constant 0 : index
    %11 = vector.load %arg6[%c0_9, %c0_10] : memref<1x128xf32, #tpu.memory_space<vmem>>, vector<1x128xf32>
    %12 = vector.shape_cast %11 : vector<1x128xf32> to vector<128xf32>
    %c0_11 = arith.constant 0 : index
    %c0_12 = arith.constant 0 : index
    %13 = vector.load %arg7[%c0_11, %c0_12] : memref<1x128xf32, #tpu.memory_space<vmem>>, vector<1x128xf32>
    %14 = vector.shape_cast %13 : vector<1x128xf32> to vector<128xf32>
    %c0_13 = arith.constant 0 : index
    %c0_14 = arith.constant 0 : index
    %15 = vector.load %arg8[%c0_13, %c0_14] : memref<1x128xf32, #tpu.memory_space<vmem>>, vector<1x128xf32>
    %16 = vector.shape_cast %15 : vector<1x128xf32> to vector<128xf32>
    %17 = arith.truncf %8 : vector<16x128xf32> to vector<16x128xbf16>
    %cst_15 = arith.constant dense<0.000000e+00> : vector<16x128xf32>
    %18 = tpu.matmul %17, %10, %cst_15 {dimension_numbers = #tpu.dot_dimension_numbers<[1], [0], [0], [1], [0, 0, 1, 1], [], []>} : vector<16x128xbf16>, vector<128x128xbf16>, vector<16x128xf32> -> vector<16x128xf32>
    %19 = vector.shape_cast %12 : vector<128xf32> to vector<1x128xf32>
    %20 = vector.broadcast %19 : vector<1x128xf32> to vector<16x128xf32>
    %21 = arith.addf %18, %20 : vector<16x128xf32>
    %cst_16 = arith.constant 0.000000e+00 : f32
    %22 = vector.broadcast %cst_16 : f32 to vector<16x128xf32>
    %23 = arith.maximumf %21, %22 : vector<16x128xf32>
    %cst_17 = arith.constant dense<0.000000e+00> : vector<16xf32>
    %24 = vector.multi_reduction <add>, %23, %cst_17 [1] : vector<16x128xf32> to vector<16xf32>
    %25 = vector.shape_cast %24 : vector<16xf32> to vector<16x1xf32>
    %cst_18 = arith.constant 3.125000e-02 : f32
    %26 = vector.broadcast %cst_18 : f32 to vector<16x1xf32>
    %27 = arith.mulf %25, %26 : vector<16x1xf32>
    %28 = arith.mulf %23, %23 : vector<16x128xf32>
    %cst_19 = arith.constant dense<0.000000e+00> : vector<16xf32>
    %29 = vector.multi_reduction <add>, %28, %cst_19 [1] : vector<16x128xf32> to vector<16xf32>
    %30 = vector.shape_cast %29 : vector<16xf32> to vector<16x1xf32>
    %cst_20 = arith.constant 3.125000e-02 : f32
    %31 = vector.broadcast %cst_20 : f32 to vector<16x1xf32>
    %32 = arith.mulf %30, %31 : vector<16x1xf32>
    %33 = arith.mulf %27, %27 : vector<16x1xf32>
    %34 = arith.subf %32, %33 : vector<16x1xf32>
    %cst_21 = arith.constant 0.000000e+00 : f32
    %35 = vector.broadcast %cst_21 : f32 to vector<16x1xf32>
    %36 = arith.maximumf %34, %35 : vector<16x1xf32>
    %37 = vector.broadcast %27 : vector<16x1xf32> to vector<16x128xf32>
    %38 = arith.subf %23, %37 : vector<16x128xf32>
    %cst_22 = arith.constant 9.99999974E-6 : f32
    %39 = vector.broadcast %cst_22 : f32 to vector<16x1xf32>
    %40 = arith.addf %36, %39 : vector<16x1xf32>
    %41 = math.rsqrt %40 : vector<16x1xf32>
    %42 = vector.broadcast %41 : vector<16x1xf32> to vector<16x128xf32>
    %43 = arith.mulf %38, %42 : vector<16x128xf32>
    %44 = vector.shape_cast %14 : vector<128xf32> to vector<1x128xf32>
    %45 = vector.broadcast %44 : vector<1x128xf32> to vector<16x128xf32>
    %46 = arith.mulf %43, %45 : vector<16x128xf32>
    %47 = vector.shape_cast %16 : vector<128xf32> to vector<1x128xf32>
    %48 = vector.broadcast %47 : vector<1x128xf32> to vector<16x128xf32>
    %49 = arith.addf %46, %48 : vector<16x128xf32>
    %50 = arith.truncf %49 : vector<16x128xf32> to vector<16x128xbf16>
    %c0_23 = arith.constant 0 : index
    %c0_24 = arith.constant 0 : index
    %51 = vector.load %arg9[%c0_23, %c0_24] : memref<128x128xbf16, #tpu.memory_space<vmem>>, vector<128x128xbf16>
    %cst_25 = arith.constant dense<0.000000e+00> : vector<16x128xf32>
    %52 = tpu.matmul %50, %51, %cst_25 {dimension_numbers = #tpu.dot_dimension_numbers<[1], [0], [0], [1], [0, 0, 1, 1], [], []>} : vector<16x128xbf16>, vector<128x128xbf16>, vector<16x128xf32> -> vector<16x128xf32>
    %c0_26 = arith.constant 0 : index
    %c0_27 = arith.constant 0 : index
    %53 = vector.load %arg10[%c0_26, %c0_27] : memref<1x128xf32, #tpu.memory_space<vmem>>, vector<1x128xf32>
    %54 = vector.shape_cast %53 : vector<1x128xf32> to vector<128xf32>
    %55 = vector.shape_cast %54 : vector<128xf32> to vector<1x128xf32>
    %56 = vector.broadcast %55 : vector<1x128xf32> to vector<16x128xf32>
    %57 = arith.addf %52, %56 : vector<16x128xf32>
    %58 = vector.shape_cast %57 : vector<16x128xf32> to vector<2x8x128xf32>
    %c0_28 = arith.constant 0 : index
    %c0_29 = arith.constant 0 : index
    %59 = vector.load %arg2[%c0_28, %c0_29] : memref<2x1xi32, #tpu.memory_space<vmem>>, vector<2x1xi32>
    %60 = tpu.iota {dimensions = array<i32: 1>} : vector<2x8x1xi32>
    %61 = vector.shape_cast %59 : vector<2x1xi32> to vector<2x1x1xi32>
    %62 = vector.broadcast %61 : vector<2x1x1xi32> to vector<2x8x1xi32>
    %63 = arith.cmpi slt, %60, %62 : vector<2x8x1xi32>
    %64 = arith.extui %63 : vector<2x8x1xi1> to vector<2x8x1xi32>
    %65 = arith.sitofp %64 : vector<2x8x1xi32> to vector<2x8x1xf32>
    %66 = vector.broadcast %65 : vector<2x8x1xf32> to vector<2x8x128xf32>
    %67 = arith.mulf %58, %66 : vector<2x8x128xf32>
    %cst_30 = arith.constant dense<0.000000e+00> : vector<2x128xf32>
    %68 = vector.multi_reduction <add>, %67, %cst_30 [1] : vector<2x8x128xf32> to vector<2x128xf32>
    %69 = arith.sitofp %59 : vector<2x1xi32> to vector<2x1xf32>
    %cst_31 = arith.constant 1.000000e+00 : f32
    %70 = vector.broadcast %cst_31 : f32 to vector<2x1xf32>
    %71 = arith.maximumf %69, %70 : vector<2x1xf32>
    %cst_32 = arith.constant 1.000000e+00 : f32
    %72 = vector.broadcast %cst_32 : f32 to vector<2x1xf32>
    %73 = arith.divf %72, %71 : vector<2x1xf32>
    %74 = vector.broadcast %73 : vector<2x1xf32> to vector<2x128xf32>
    %75 = arith.mulf %68, %74 : vector<2x128xf32>
    %c0_33 = arith.constant 0 : index
    %c0_34 = arith.constant 0 : index
    %76 = vector.load %arg11[%c0_33, %c0_34] : memref<2x128xf32, #tpu.memory_space<vmem>>, vector<2x128xf32>
    tpu.vector_store %arg11[%c0_33, %c0_34], %75 {strides = array<i32>} : memref<2x128xf32, #tpu.memory_space<vmem>>, vector<2x128xf32>,
    return
  }
  func.func @transform_0(%arg0: i32) -> (i32, i32, i32) {
    %c0_i32 = arith.constant 0 : i32
    %c0_i32_0 = arith.constant 0 : i32
    %c0_i32_1 = arith.constant 0 : i32
    return %arg0, %c0_i32, %c0_i32_0 : i32, i32, i32
  }
  func.func @transform_1(%arg0: i32) -> (i32, i32) {
    %c0_i32 = arith.constant 0 : i32
    %c0_i32_0 = arith.constant 0 : i32
    return %arg0, %c0_i32 : i32, i32
  }
  func.func @transform_2(%arg0: i32) -> (i32, i32) {
    %c0_i32 = arith.constant 0 : i32
    %c0_i32_0 = arith.constant 0 : i32
    %c0_i32_1 = arith.constant 0 : i32
    return %c0_i32, %c0_i32_0 : i32, i32
  }
  func.func @transform_3(%arg0: i32) -> (i32, i32) {
    %c0_i32 = arith.constant 0 : i32
    %c0_i32_0 = arith.constant 0 : i32
    %c0_i32_1 = arith.constant 0 : i32
    return %c0_i32, %c0_i32_0 : i32, i32
  }
  func.func @transform_4(%arg0: i32) -> (i32, i32, i32) {
    %c0_i32 = arith.constant 0 : i32
    %c0_i32_0 = arith.constant 0 : i32
    %c0_i32_1 = arith.constant 0 : i32
    %c0_i32_2 = arith.constant 0 : i32
    return %c0_i32, %c0_i32_0, %c0_i32_1 : i32, i32, i32
  }
  func.func @transform_5(%arg0: i32) -> (i32, i32) {
    %c0_i32 = arith.constant 0 : i32
    %c0_i32_0 = arith.constant 0 : i32
    %c0_i32_1 = arith.constant 0 : i32
    return %c0_i32, %c0_i32_0 : i32, i32
  }
  func.func @transform_6(%arg0: i32) -> (i32, i32) {
    %c0_i32 = arith.constant 0 : i32
    %c0_i32_0 = arith.constant 0 : i32
    %c0_i32_1 = arith.constant 0 : i32
    return %c0_i32, %c0_i32_0 : i32, i32
  }
  func.func @transform_7(%arg0: i32) -> (i32, i32) {
    %c0_i32 = arith.constant 0 : i32
    %c0_i32_0 = arith.constant 0 : i32
    %c0_i32_1 = arith.constant 0 : i32
    return %c0_i32, %c0_i32_0 : i32, i32
  }
  func.func @transform_8(%arg0: i32) -> (i32, i32) {
    %c0_i32 = arith.constant 0 : i32
    %c0_i32_0 = arith.constant 0 : i32
    %c0_i32_1 = arith.constant 0 : i32
    return %c0_i32, %c0_i32_0 : i32, i32
  }
  func.func @transform_9(%arg0: i32) -> (i32, i32) {
    %c0_i32 = arith.constant 0 : i32
    %c0_i32_0 = arith.constant 0 : i32
    %c0_i32_1 = arith.constant 0 : i32
    return %c0_i32, %c0_i32_0 : i32, i32
  }
  func.func @transform_10(%arg0: i32) -> (i32, i32) {
    %c0_i32 = arith.constant 0 : i32
    %c0_i32_0 = arith.constant 0 : i32
    return %arg0, %c0_i32 : i32, i32
  }
}

</mosaic_0001>

<bundles_post_ra>
// kernel: tpu_custom_call.1
= control target key start
LH: loop header
LB: loop body
LE: loop exit
PB: predicated region body
PF: predicated region fallthrough
CT: control target
= control target key end

     0   :  { %15 = vsyncpa [#allocation3], 0  ;;  %s1012_s0 = inlined_call_operand.hbm [shape: bf16[2,8,128], index: 0, kind: input, shape index: {}]   ;;  %s1013_s1 = inlined_call_operand.vmem [shape: s32[2,1], index: 1, kind: input, shape index: {}]   ;;  %s1014_s2 = inlined_call_operand.hbm [shape: bf16[128,128], index: 2, kind: input, shape index: {}]   ;;  %s1015_s3 = inlined_call_operand.vmem [shape: f32[1,128], index: 3, kind: input, shape index: {}]   ;;  %s1016_s4 = inlined_call_operand.hbm [shape: bf16[1,128,128], index: 4, kind: input, shape index: {}]   ;;  %s1017_s5 = inlined_call_operand.vmem [shape: f32[1,128], index: 5, kind: input, shape index: {}]   ;;  %s1018_s6 = inlined_call_operand.vmem [shape: f32[1,128], index: 6, kind: input, shape index: {}]   ;;  %s1019_s7 = inlined_call_operand.vmem [shape: f32[1,128], index: 7, kind: input, shape index: {}]   ;;  %s1020_s8 = inlined_call_operand.hbm [shape: bf16[128,128], index: 8, kind: input, shape index: {}]   ;;  %s1021_s9 = inlined_call_operand.vmem [shape: f32[1,128], index: 9, kind: input, shape index: {}]   ;;  %s1022_s10 = inlined_call_operand.hbm [shape: f32[2,128], index: 10, kind: output, shape index: {}]  }
   0x1   :  { %16 = vsyncpa [#allocation6], 0 }
   0x2   :  { %17 = vsyncpa [#allocation9], 0 }
   0x3   :  { %18 = vsyncpa [#allocation4], 0  ;;  %s857_s13 = smov [#allocation5]   ;;  %s858_s15 = smov [#allocation2]  }
   0x4   :  { %s38_s14 = sshll.u32 %s857_s13, 4  ;;  %s24_s16 = sshll.u32 %s858_s15, 4  ;;  %s39_s14 = int_to_ptr.vmem [resolvable:$true] %s38_s14  ;;  %s25_s16 = int_to_ptr.vmem [resolvable:$true] %s24_s16 }
   0x5   :  { %s757_s17 = scalar_lea.vmem %s39_s14, 1024  ;;  %p762_p1 = scmp.lt.s32.totalorder %s39_s14, %s39_s14 }
   0x6   :  { %p758_p0 = scmp.ne.s32.totalorder %s39_s14, %s757_s17  ;;  %p763_p2 = scmp.lt.s32.totalorder %s757_s17, %s757_s17 }
   0x8   :  { %p764_p3 = por %p763_p2, %p762_p1 }
   0xa   :  { %p765_p4 = pnand %p764_p3, %p758_p0 }
   0xc   :  { %768 = shalt.err (!%p765_p4)
}
   0xd   :  { %s859_s18 = smov 64   ;;  %s860_s19 = smov 4  }
   0xe   :  { %44 = dma.hbm_to_vmem [thread:$0]  %s1014_s2, 1024, %s39_s14, [#allocation6], %s859_s18, %s859_s18, %s860_s19  }
   0xf   :  { %s777_s22 = scalar_lea.vmem %s25_s16, 128  ;;  %p782_p6 = scmp.lt.s32.totalorder %s25_s16, %s25_s16 }
  0x10   :  { %p778_p5 = scmp.ne.s32.totalorder %s25_s16, %s777_s22  ;;  %p783_p7 = scmp.lt.s32.totalorder %s777_s22, %s777_s22 }
  0x12   :  { %p784_p8 = por %p783_p7, %p782_p6 }
  0x14   :  { %p785_p9 = pnand %p784_p8, %p778_p5 }
  0x16   :  { %788 = shalt.err (!%p785_p9)
}
  0x17   :  { %30 = dma.hbm_to_vmem [thread:$0]  %s1012_s0, 128, %s25_s16, [#allocation3], %s859_s18, %s859_s18, %s860_s19  }
  0x18   :  { %s861_s25 = smov [#allocation7]   ;;  %s862_s27 = smov [#allocation8]  }
  0x19   :  { %s52_s26 = sshll.u32 %s861_s25, 4  ;;  %s70_s28 = sshll.u32 %s862_s27, 4  ;;  %s53_s26 = int_to_ptr.vmem [resolvable:$true] %s52_s26  ;;  %s71_s28 = int_to_ptr.vmem [resolvable:$true] %s70_s28 }
  0x1a   :  { %s797_s2 = scalar_lea.vmem %s53_s26, 1024  ;;  %p802_p11 = scmp.lt.s32.totalorder %s53_s26, %s53_s26 }
  0x1b   :  { %p798_p10 = scmp.ne.s32.totalorder %s53_s26, %s797_s2  ;;  %p803_p12 = scmp.lt.s32.totalorder %s797_s2, %s797_s2 }
  0x1d   :  { %p804_p13 = por %p803_p12, %p802_p11 }
  0x1f   :  { %p805_p0 = pnand %p804_p13, %p798_p10 }
  0x21   :  { %808 = shalt.err (!%p805_p0)
}
  0x22   :  { %58 = dma.hbm_to_vmem [thread:$0]  %s1016_s4, 1024, %s53_s26, [#allocation6], %s859_s18, %s859_s18, %s860_s19  }
  0x23   :  { %s817_s0 = scalar_lea.vmem %s71_s28, 1024  ;;  %p822_p2 = scmp.lt.s32.totalorder %s71_s28, %s71_s28 }
  0x24   :  { %p818_p1 = scmp.ne.s32.totalorder %s71_s28, %s817_s0  ;;  %p823_p3 = scmp.lt.s32.totalorder %s817_s0, %s817_s0 }
  0x26   :  { %p824_p4 = por %p823_p3, %p822_p2 }
  0x28   :  { %p825_p5 = pnand %p824_p4, %p818_p1 }
  0x2a   :  { %828 = shalt.err (!%p825_p5)
}
  0x2b   :  { %76 = dma.hbm_to_vmem [thread:$0]  %s1020_s8, 1024, %s71_s28, [#allocation9], %s859_s18, %s859_s18, %s860_s19  }
  0x2c   :  { %849 = dma.done.wait [#allocation3], 128  }
  0x2d   :  { %850 = vsyncadd [#allocation3], 4294967168 }
  0x2e   :  { %851 = dma.done.wait [#allocation6], 2048  }
  0x2f   :  { %852 = vsyncadd [#allocation6], 4294965248 }
  0x30   :  { %853 = dma.done.wait [#allocation9], 1024  }
  0x31   :  { %854 = vsyncadd [#allocation9], 4294966272  ;;  %v863_v0 = vmov 0.0   ;;  %vm864_vm0 = vmmov 0   ;;  %v718_v1 = vld [vmem:[#allocation5 + $0x38] sm:$0xff]   ;;  %v719_v2 = vld [vmem:[#allocation5 + $0x30] sm:$0xff]   ;;  %v487_v46 = vlaneseq }
  0x32   :  { %645 = vmatprep.subr.bf16.mxu0 %v863_v0  ;;  %661 = vmatprep.mubr.msk.bf16.mxu0 %vm864_vm0, %v863_v0  ;;  %v720_v3 = vld [vmem:[#allocation5 + $0x28] sm:$0xff]   ;;  %v727_v4 = vld [vmem:[#allocation7 + $0x38] sm:$0xff]   ;;  %v721_v5 = vld [vmem:[#allocation5 + $0x20] sm:$0xff]   ;;  %v865_v47 = vmov 0   ;;  %v866_v48 = vmov 1966171168  }
  0x33   :  { %665 = vmatprep.subr.bf16.mxu1 %v863_v0  ;;  %681 = vmatprep.mubr.msk.bf16.mxu1 %vm864_vm0, %v863_v0  ;;  %v728_v6 = vld [vmem:[#allocation7 + $0x30] sm:$0xff]   ;;  %v722_v7 = vld [vmem:[#allocation5 + $0x18] sm:$0xff]   ;;  %v729_v8 = vld [vmem:[#allocation7 + $0x28] sm:$0xff]   ;;  %v490_v49 = vunpack.c.l.s4 %v866_v48  ;;  %v488_v51 = vshrl.u32 %v487_v46, 7  ;;  %vm565_vm3 = vcmask 1041409  }
  0x34   :  { %646 = vmatpush3.bf16.msra.mxu0 %v718_v1  ;;  %666 = vmatpush3.bf16.msra.mxu1 %v727_v4  ;;  %v723_v9 = vld [vmem:[#allocation5 + $0x10] sm:$0xff]   ;;  %v730_v10 = vld [vmem:[#allocation7 + $0x20] sm:$0xff]   ;;  %v724_v11 = vld [vmem:[#allocation5 + $0x8] sm:$0xff]  }
  0x35   :  { %647 = vmatprep.subr.bf16.mxu0 %v863_v0  ;;  %667 = vmatprep.subr.bf16.mxu1 %v863_v0  ;;  %v731_v12 = vld [vmem:[#allocation7 + $0x18] sm:$0xff]   ;;  %v725_v13 = vld [vmem:[#allocation5] sm:$0xff]   ;;  %v732_v14 = vld [vmem:[#allocation7 + $0x10] sm:$0xff]   ;;  %v491_v52 = vunpack.c.0.s8 %v490_v49  ;;  %v513_v56 = vsub.s32 0, %v488_v51 }
  0x36   :  { %v726_v15 = vld [vmem:[#allocation2] sm:$0xff]   ;;  %v733_v16 = vld [vmem:[#allocation7 + $0x8] sm:$0xff]   ;;  %v734_v17 = vld [vmem:[#allocation7] sm:$0xff]   ;;  %717 = vset.pattern.permute.xlu1 %v865_v47  ;;  %716 = vset.pattern.permute.xlu0 %v865_v47 }
  0x37   :  { %v586_v19 = vld [vmem:[%s1015_s3] ss:$0 sm:$0xff]  ;;  %v736_v38 = vld [vmem:[#allocation8 + $0x30] sm:$0xff]   ;;  %v737_v39 = vld [vmem:[#allocation8 + $0x28] sm:$0xff]   ;;  %v494_v54 = vsub.s32 %v491_v52, %v488_v51 }
  0x38   :  { %648 = vmatpush3.bf16.msra.mxu0 %v719_v2  ;;  %668 = vmatpush3.bf16.msra.mxu1 %v728_v6  ;;  %v596_v26 = vld [vmem:[%s1017_s5] ss:$0 sm:$0xff]  ;;  %v738_v40 = vld [vmem:[#allocation8 + $0x20] sm:$0xff]   ;;  %v740_v42 = vld [vmem:[#allocation8 + $0x10] sm:$0xff]  }
  0x39   :  { %649 = vmatprep.subr.bf16.mxu0 %v863_v0  ;;  %669 = vmatprep.subr.bf16.mxu1 %v863_v0  ;;  %v735_v37 = vld [vmem:[#allocation8 + $0x38] sm:$0xff]   ;;  %v741_v43 = vld [vmem:[#allocation8 + $0x8] sm:$0xff]   ;;  %v742_v44 = vld [vmem:[#allocation8] sm:$0xff]  }
  0x3a   :  { %v739_v41 = vld [vmem:[#allocation8 + $0x18] sm:$0xff]  }
  0x3b   :  { %v486_v45 = vld [vmem:[%s1013_s1] sm:$0x3] }
  0x3c   :  { %650 = vmatpush3.bf16.msra.mxu0 %v720_v3  ;;  %670 = vmatpush3.bf16.msra.mxu1 %v729_v8  ;;  %v549_v50 = vcvt.s32.f32 %v486_v45  ;;  %v495_v55 = vrot.slane %v486_v45, %v494_v54 }
  0x3d   :  { %651 = vmatprep.subr.bf16.mxu0 %v863_v0  ;;  %671 = vmatprep.subr.bf16.mxu1 %v863_v0 }
  0x3e   :  { %v550_v53 = vmax.f32 %v549_v50, 1.0  ;;  %v503_v57 = vrot.slane %v495_v55, %v494_v54  ;;  %v496_v58 = vcombine.high %v495_v55, %v495_v55 }
  0x40   :  { %652 = vmatpush3.bf16.msra.mxu0 %v721_v5  ;;  %672 = vmatpush3.bf16.msra.mxu1 %v730_v10  ;;  %743 = vrcp.f32 %v550_v53  ;;  %v514_v59 = vrot.slane %v503_v57, %v513_v56  ;;  %v510_v60 = vrot.slane %v496_v58, %v494_v54 }
  0x41   :  { %653 = vmatprep.subr.bf16.mxu0 %v863_v0  ;;  %673 = vmatprep.subr.bf16.mxu1 %v863_v0 }
  0x42   :  { %vm519_vm1 = vcmp.lt.s32.totalorder %v488_v51, %v514_v59  ;;  %v518_v61 = vrot.slane %v510_v60, %v513_v56 }
  0x43   :  { %v616_v62 = vsel %vm519_vm1, 1.0, %v863_v0 }
  0x44   :  { %654 = vmatpush3.bf16.msra.mxu0 %v722_v7  ;;  %674 = vmatpush3.bf16.msra.mxu1 %v731_v12  ;;  %vm520_vm2 = vcmp.lt.s32.totalorder %v488_v51, %v518_v61 }
  0x45   :  { %655 = vmatprep.subr.bf16.mxu0 %v863_v0  ;;  %675 = vmatprep.subr.bf16.mxu1 %v863_v0  ;;  %v617_v63 = vsel %vm520_vm2, 1.0, %v863_v0 }
  0x48   :  { %656 = vmatpush3.bf16.msra.mxu0 %v723_v9  ;;  %676 = vmatpush3.bf16.msra.mxu1 %v732_v14 }
  0x49   :  { %657 = vmatprep.subr.bf16.mxu0 %v863_v0  ;;  %677 = vmatprep.subr.bf16.mxu1 %v863_v0 }
  0x4c   :  { %658 = vmatpush3.bf16.msra.mxu0 %v724_v11  ;;  %678 = vmatpush3.bf16.msra.mxu1 %v733_v16 }
  0x4d   :  { %659 = vmatprep.subr.bf16.mxu0 %v863_v0  ;;  %679 = vmatprep.subr.bf16.mxu1 %v863_v0  ;;  %v744_v1 = vpop.eup %743 }
  0x50   :  { %660 = vmatpush3.bf16.msra.mxu0 %v725_v13  ;;  %680 = vmatpush3.bf16.msra.mxu1 %v734_v17 }
  0x51   :  { %685 = vmatprep.subr.bf16.mxu0 %v863_v0 }
  0x53   :  { %662 = vmatmul.mubr.bf16.vlgmr.msra.gmra.mxu0 %v726_v15 }
  0x54   :  { %701 = vmatprep.mubr.msk.bf16.mxu0 %vm864_vm0, %v863_v0  ;;  %686 = vmatpush3.bf16.msra.mxu0 %v735_v37 }
  0x55   :  { %687 = vmatprep.subr.bf16.mxu0 %v863_v0 }
  0x58   :  { %688 = vmatpush3.bf16.msra.mxu0 %v736_v38 }
  0x59   :  { %689 = vmatprep.subr.bf16.mxu0 %v863_v0 }
  0x5c   :  { %690 = vmatpush3.bf16.msra.mxu0 %v737_v39 }
  0x5d   :  { %691 = vmatprep.subr.bf16.mxu0 %v863_v0 }
  0x60   :  { %692 = vmatpush3.bf16.msra.mxu0 %v738_v40 }
  0x61   :  { %693 = vmatprep.subr.bf16.mxu0 %v863_v0 }
  0x64   :  { %694 = vmatpush3.bf16.msra.mxu0 %v739_v41 }
  0x65   :  { %695 = vmatprep.subr.bf16.mxu0 %v863_v0 }
  0x68   :  { %696 = vmatpush3.bf16.msra.mxu0 %v740_v42 }
  0x69   :  { %697 = vmatprep.subr.bf16.mxu0 %v863_v0 }
  0x6c   :  { %698 = vmatpush3.bf16.msra.mxu0 %v741_v43 }
  0x6d   :  { %699 = vmatprep.subr.bf16.mxu0 %v863_v0 }
  0x70   :  { %700 = vmatpush3.bf16.msra.mxu0 %v742_v44 }
 0x113   :  { %v205_v18 = vpop.f32.mrf.mxu0 }
 0x114   :  { %v206_v22 = vadd.f32 %v586_v19, %v205_v18 }
 0x115   :  { %v663_v20 = vpop.f32.mrf.mxu0 }
 0x116   :  { %v605_v20 = vld [vmem:[%s1018_s6] ss:$0 sm:$0xff]  ;;  %s867_s6 = smov [#allocation10]  }
 0x117   :  { %v208_v21 = vpop.f32.mrf.mxu0 }
 0x118   :  { %v209_v23 = vadd.f32 %v586_v19, %v208_v21 }
 0x119   :  { %v664_v24 = vpop.f32.mrf.mxu0 }
 0x11a   :  { %v231_v25 = vpack.c.bf16 %v209_v23, %v206_v22 }
 0x11c   :  { %682 = vmatmul.mubr.bf16.vlgmr.msra.gmra.mxu1 %v231_v25  ;;  %v606_v25 = vld [vmem:[%s1019_s7] ss:$0 sm:$0xff]  ;;  %s575_s7 = sshll.u32 %s867_s6, 4  ;;  %s576_s7 = int_to_ptr.vmem [resolvable:$true] %s575_s7 }
 0x11d   :  { %p834_p7 = scmp.lt.s32.totalorder %s576_s7, %s576_s7 }
 0x1dc   :  { %v320_v27 = vpop.f32.mrf.mxu1 }
 0x1dd   :  { %v321_v28 = vadd.f32 %v596_v26, %v320_v27 }
 0x1de   :  { %v683_v29 = vpop.f32.mrf.mxu1 }
 0x1df   :  { %v976_v30 = vmax.f32 %v321_v28, 0.0 }
 0x1e0   :  { %v323_v31 = vpop.f32.mrf.mxu1 }
 0x1e1   :  { %v324_v32 = vadd.f32 %v596_v26, %v323_v31  ;;  %329 = vadd.xlane.f32.xlu0 %v976_v30  ;;  %v335_v33 = vmul.f32 %v976_v30, %v976_v30 }
 0x1e2   :  { %v684_v34 = vpop.f32.mrf.mxu1 }
 0x1e3   :  { %v981_v35 = vmax.f32 %v324_v32, 0.0  ;;  %337 = vadd.xlane.f32.xlu1 %v335_v33 }
 0x1e5   :  { %331 = vadd.xlane.f32.xlu0 %v981_v35  ;;  %v336_v36 = vmul.f32 %v981_v35, %v981_v35 }
 0x1e7   :  { %339 = vadd.xlane.f32.xlu1 %v336_v36 }
 0x1f8   :  { %527 = vperm.xlu1 %717, %v616_v62  }
 0x1fb   :  { %532 = vperm.xlu0 %716, %v617_v63  }
 0x1fc   :  { %555 = vperm.xlu1 %717, %v744_v1  }
 0x26a   :  { %v330_v2 = vpop.xlane.xlu0 %329 }
 0x26b   :  { %v333_v3 = vmul.f32 0.03125, %v330_v2 }
 0x26c   :  { %v338_v4 = vpop.xlane.xlu1 %337 }
 0x26d   :  { %v343_v5 = vmul.f32 %v333_v3, %v333_v3  ;;  %v341_v6 = vmul.f32 0.03125, %v338_v4  ;;  %v349_v17 = vsub.f32 %v976_v30, %v333_v3  ;;  %v607_v30 = vld [vmem:[%s1021_s9] ss:$0 sm:$0xff]  ;;  %s829_s9 = scalar_lea.vmem %s576_s7, 32 }
 0x26e   :  { %v332_v7 = vpop.xlane.xlu0 %331  ;;  %p830_p6 = scmp.ne.s32.totalorder %s576_s7, %s829_s9  ;;  %p835_p8 = scmp.lt.s32.totalorder %s829_s9, %s829_s9 }
 0x26f   :  { %v345_v8 = vsub.f32 %v341_v6, %v343_v5  ;;  %v334_v9 = vmul.f32 0.03125, %v332_v7 }
 0x270   :  { %v340_v10 = vpop.xlane.xlu1 %339  ;;  %p836_p9 = por %p835_p8, %p834_p7 }
 0x271   :  { %v347_v11 = vmax.f32 %v345_v8, 0.0  ;;  %v344_v12 = vmul.f32 %v334_v9, %v334_v9  ;;  %v342_v13 = vmul.f32 0.03125, %v340_v10  ;;  %v350_v21 = vsub.f32 %v981_v35, %v334_v9 }
 0x272   :  { %p837_p10 = pnand %p836_p9, %p830_p6 }
 0x273   :  { %v351_v14 = vadd.f32 1e-05, %v347_v11  ;;  %v346_v15 = vsub.f32 %v342_v13, %v344_v12 }
 0x274   :  { %v528_v32 = vpop.permute.xlu1 %527 }
 0x275   :  { %745 = vrsqrt.f32 %v351_v14  ;;  %v348_v16 = vmax.f32 %v346_v15, 0.0 }
 0x276   :  { %v533_v37 = vpop.permute.xlu0 %532 }
 0x277   :  { %v352_v0 = vadd.f32 1e-05, %v348_v16 }
 0x278   :  { %v556_v50 = vpop.permute.xlu1 %555 }
 0x279   :  { %747 = vrsqrt.f32 %v352_v0  ;;  %v557_v54 = vrot.slane %v556_v50, 1 }
 0x282   :  { %v746_v18 = vpop.eup %745 }
 0x283   :  { %v355_v19 = vmul.f32 %v746_v18, %v349_v17 }
 0x285   :  { %v363_v24 = vmul.f32 %v605_v20, %v355_v19 }
 0x286   :  { %v748_v22 = vpop.eup %747 }
 0x287   :  { %v356_v23 = vmul.f32 %v748_v22, %v350_v21  ;;  %v371_v27 = vadd.f32 %v606_v25, %v363_v24 }
 0x289   :  { %v364_v26 = vmul.f32 %v605_v20, %v356_v23 }
 0x28b   :  { %v372_v28 = vadd.f32 %v606_v25, %v364_v26 }
 0x28d   :  { %v373_v29 = vpack.c.bf16 %v372_v28, %v371_v27 }
 0x28f   :  { %702 = vmatmul.mubr.bf16.vlgmr.msra.gmra.mxu0 %v373_v29 }
 0x34f   :  { %v479_v31 = vpop.f32.mrf.mxu0 }
 0x350   :  { %v480_v33 = vadd.f32 %v607_v30, %v479_v31 }
 0x351   :  { %v703_v34 = vpop.f32.mrf.mxu0 }
 0x352   :  { %v535_v35 = vmul.f32 %v528_v32, %v480_v33 }
 0x353   :  { %v482_v36 = vpop.f32.mrf.mxu0 }
 0x354   :  { %v537_v38 = vrot.slane %v535_v35, 4  ;;  %v483_v39 = vadd.f32 %v607_v30, %v482_v36 }
 0x355   :  { %v704_v40 = vpop.f32.mrf.mxu0 }
 0x356   :  { %v538_v41 = vadd.f32 %v537_v38, %v535_v35  ;;  %v536_v42 = vmul.f32 %v533_v37, %v483_v39 }
 0x358   :  { %v539_v43 = vrot.slane %v538_v41, 2  ;;  %v543_v44 = vrot.slane %v536_v42, 4 }
 0x35a   :  { %v544_v45 = vadd.f32 %v543_v44, %v536_v42  ;;  %v540_v46 = vadd.f32 %v539_v43, %v538_v41 }
 0x35c   :  { %v545_v47 = vrot.slane %v544_v45, 2  ;;  %v541_v49 = vrot.slane %v540_v46, 1 }
 0x35e   :  { %v546_v48 = vadd.f32 %v545_v47, %v544_v45  ;;  %v542_v52 = vadd.f32 %v541_v49, %v540_v46 }
 0x360   :  { %v547_v51 = vrot.slane %v546_v48, 1  ;;  %v560_v56 = vmul.f32 %v556_v50, %v542_v52 }
 0x362   :  { %v548_v53 = vadd.f32 %v547_v51, %v546_v48 }
 0x364   :  { %v561_v55 = vmul.f32 %v557_v54, %v548_v53 }
 0x366   :  { %v564_v57 = vrot.slane %v561_v55, 7 }
 0x368   :  { %v566_v58 = vsel %vm565_vm3, %v564_v57, %v560_v56 }
 0x369   :  { %568 = vst [vmem:[#allocation10] sm:$0x3] %v566_v58 }
 0x36a   :  { %840 = shalt.err (!%p837_p10)
}
 0x36b   :  { %578 = dma.vmem_to_hbm [thread:$0]  %s576_s7, 32, %s1022_s10, [#allocation4]  }
 0x36c   :  { %855 = dma.done.wait [#allocation4], 32  }
 0x36d   :  { %856 = vsyncadd [#allocation4], 4294967264 }
 0x36e   :  { %582 = vsyncpa [#allocation3], 1 }
 0x36f   :  { %583 = vsyncpa [#allocation6], 1 }
 0x370   :  { %584 = vsyncpa [#allocation9], 1 }
 0x371   :  { %585 = vsyncpa [#allocation4], 1 }

</bundles_post_ra>
